<compile_context>
chip_gen: v5e
topology: v5e:2x2
jax: 0.10.0
libtpu: 0.0.40
codegen_flags: <defaults>
</compile_context>

<pallas_src>
import functools

import jax
import jax.numpy as jnp
from jax.experimental import pallas as pl
from jax.experimental.pallas import tpu as pltpu

# Module hyper-parameters (from __init__ defaults).
GAMMA_POS = 0      # unused in forward
GAMMA_NEG = 4      # unused in forward
GAMMA_LC = 2
GAMMA_HC = 1       # unused in forward
EPS = 0.1          # unused in forward
EPOCHS = 50
FACTOR = 1.0
ALPHA = 0.5

_VMEM_LIMIT = 32 * 1024 * 1024   # explicit scoped-VMEM budget (portable to v7x)


def _compute_eta(epoch):
    # Python-scalar branch, exactly as in the PyTorch module.
    if FACTOR * epoch < EPOCHS:
        return 1.0 - FACTOR * epoch * 1.0 / (1.0 * EPOCHS)
    return (FACTOR * epoch / (1.0 * EPOCHS) - 1.0) / (FACTOR - 1.0)


def _elementwise_loss(x, t, c_hi, c_lo, alpha_in_kernel):
    """Per-element TStage focal loss in f32. c_hi/c_lo are pre-folded scalars."""
    # One exp shared between the stable BCE-with-logits and the sigmoid.
    e = jnp.exp(-jnp.abs(x))
    ce = jnp.maximum(x, 0.0) - x * t + jnp.log1p(e)

    r = 1.0 / (1.0 + e)
    p = jnp.where(x >= 0.0, r, e * r)          # == sigmoid(x)
    p_t = p * t + (1.0 - p) * (1.0 - t)
    om = 1.0 - p_t

    # (4 * max(p_t - 0.5, 0)) ** 7 via repeated multiply (avoid pow).
    m = 4.0 * jnp.maximum(p_t - 0.5, 0.0)
    m2 = m * m
    m4 = m2 * m2
    m7 = m4 * m2 * m

    om2 = om * om
    term_hi = m7 + 0.25 * om2                  # + (0.5 * (1 - p_t)) ** 2
    term_lo = om2                              # (1 - p_t) ** gamma_lc, gamma_lc == 2

    loss = (c_hi * term_hi + c_lo * term_lo) * ce

    if alpha_in_kernel is not None:            # general alpha (not folded on host)
        a = alpha_in_kernel
        alpha_t = a * t + (1.0 - a) * (1.0 - t)
        loss = alpha_t * loss
    return loss


def _focal_elementwise_kernel(coef_ref, x_ref, t_ref, out_ref, *, alpha_in_kernel):
    x = x_ref[...].astype(jnp.float32)
    t = t_ref[...].astype(jnp.float32)
    loss = _elementwise_loss(x, t, coef_ref[0], coef_ref[1], alpha_in_kernel)
    out_ref[...] = loss.astype(out_ref.dtype)


def _focal_sum_kernel(coef_ref, x_ref, t_ref, out_ref, *, alpha_in_kernel,
                      tile_rows, total_rows):
    i = pl.program_id(0)

    @pl.when(i == 0)
    def _():
        out_ref[0, 0] = 0.0

    x = x_ref[...].astype(jnp.float32)
    t = t_ref[...].astype(jnp.float32)
    loss = _elementwise_loss(x, t, coef_ref[0], coef_ref[1], alpha_in_kernel)

    if total_rows % tile_rows != 0:
        # Mask padded rows of the last partial batch tile.
        rows = jax.lax.broadcasted_iota(jnp.int32, loss.shape, 0) + i * tile_rows
        loss = jnp.where(rows < total_rows, loss, 0.0)

    out_ref[0, 0] += jnp.sum(loss)


def _choose_tile_rows(B, C, itemsize, target_bytes=1 << 20):
    bytes_per_row = max(itemsize, 4) * C
    tb = max(8, (target_bytes // bytes_per_row) // 8 * 8)
    return B if tb >= B else tb


def tstage_focal_loss(inputs, target, epoch, reduction=None,
                      alpha=ALPHA, tile_rows=None):
    """inputs: (B, C) logits; target: (B, C) same-shape (one-hot) labels."""
    B, C = inputs.shape
    eta = _compute_eta(epoch)

    # alpha >= 0 branch of the module; alpha == 0.5 folds to a constant scale.
    if alpha >= 0 and float(alpha) == 0.5:
        scale, alpha_in_kernel = 0.5, None
    elif alpha >= 0:
        scale, alpha_in_kernel = 1.0, float(alpha)
    else:
        scale, alpha_in_kernel = 1.0, None

    coeffs = jnp.asarray(
        [eta * scale / 30.0, (1.0 - eta) * scale / 5.0], dtype=jnp.float32)

    if tile_rows is None:
        tile_rows = _choose_tile_rows(B, C, jnp.dtype(inputs.dtype).itemsize)
    grid = (pl.cdiv(B, tile_rows),)

    tile_spec = pl.BlockSpec((tile_rows, C), lambda i: (i, 0))
    smem_spec = pl.BlockSpec(memory_space=pltpu.MemorySpace.SMEM)

    if reduction in ("mean", "sum"):
        kernel = functools.partial(
            _focal_sum_kernel, alpha_in_kernel=alpha_in_kernel,
            tile_rows=tile_rows, total_rows=B)
        total = pl.pallas_call(
            kernel,
            out_shape=jax.ShapeDtypeStruct((1, 1), jnp.float32),
            grid=grid,
            in_specs=[smem_spec, tile_spec, tile_spec],
            out_specs=smem_spec,
            compiler_params=pltpu.CompilerParams(
                dimension_semantics=("arbitrary",),
                vmem_limit_bytes=_VMEM_LIMIT),
        )(coeffs, inputs, target)[0, 0]
        if reduction == "mean":
            return total / (B * C)
        return total

    kernel = functools.partial(
        _focal_elementwise_kernel, alpha_in_kernel=alpha_in_kernel)
    return pl.pallas_call(
        kernel,
        out_shape=jax.ShapeDtypeStruct((B, C), inputs.dtype),
        grid=grid,
        in_specs=[smem_spec, tile_spec, tile_spec],
        out_specs=tile_spec,
        compiler_params=pltpu.CompilerParams(
            dimension_semantics=("parallel",),
            vmem_limit_bytes=_VMEM_LIMIT),
    )(coeffs, inputs, target)


def _reference(inputs, target, epoch):
    # Pure-JAX reference mirroring the PyTorch forward (reduction=None path).
    x = inputs.astype(jnp.float32)
    t = target.astype(jnp.float32)
    ce = jnp.maximum(x, 0.0) - x * t + jnp.log1p(jnp.exp(-jnp.abs(x)))
    p = jax.nn.sigmoid(x)
    p_t = p * t + (1 - p) * (1 - t)
    eta = _compute_eta(epoch)
    loss = (
        eta * ((4.0 * jnp.maximum(p_t - 0.5, 0.0)) ** 7 + (0.5 * (1 - p_t)) ** 2) / 30.0
        + (1 - eta) * (1 - p_t) ** GAMMA_LC / 5.0
    ) * ce
    alpha_t = ALPHA * t + (1 - ALPHA) * (1 - t)
    return alpha_t * loss


if __name__ == "__main__":
    key = jax.random.PRNGKey(0)
    epoch = 10

    # --- case 1: small aligned shape, single tile ---------------------------
    B, C = 8, 128
    k1, k2, k3, k4 = jax.random.split(key, 4)
    logits = jax.random.normal(k1, (B, C), dtype=jnp.float32) * 2.0
    labels = jax.random.randint(k2, (B,), 0, C)
    target = jax.nn.one_hot(labels, C, dtype=jnp.float32)

    out = jax.block_until_ready(tstage_focal_loss(logits, target, epoch))
    ref = _reference(logits, target, epoch)
    assert out.shape == (B, C)
    assert jnp.allclose(out, ref, atol=1e-5, rtol=1e-5), "elementwise mismatch"

    loss_mean = jax.block_until_ready(
        tstage_focal_loss(logits, target, epoch, reduction="mean"))
    assert jnp.allclose(loss_mean, ref.mean(), atol=1e-6, rtol=1e-5), "mean mismatch"

    # --- case 2: multi-tile grid with a partial last batch tile --------------
    B2, C2 = 20, 128
    logits2 = jax.random.normal(k3, (B2, C2), dtype=jnp.float32) * 2.0
    labels2 = jax.random.randint(k4, (B2,), 0, C2)
    target2 = jax.nn.one_hot(labels2, C2, dtype=jnp.float32)
    ref2 = _reference(logits2, target2, epoch)

    out2 = jax.block_until_ready(
        tstage_focal_loss(logits2, target2, epoch, tile_rows=8))
    assert jnp.allclose(out2, ref2, atol=1e-5, rtol=1e-5), "tiled elementwise mismatch"

    sum2 = jax.block_until_ready(
        tstage_focal_loss(logits2, target2, epoch, reduction="sum", tile_rows=8))
    assert jnp.allclose(sum2, ref2.sum(), atol=1e-4, rtol=1e-5), "fused sum mismatch"

    print("KERNEL_OK")
</pallas_src>

<mosaic_0001>
module attributes {stable_mosaic.version = 11 : i64} {
  func.func @_focal_elementwise_kernel(%arg0: i32, %arg1: memref<2xf32, #tpu.memory_space<smem>>, %arg2: memref<8x128xf32, #tpu.memory_space<vmem>>, %arg3: memref<8x128xf32, #tpu.memory_space<vmem>>, %arg4: memref<8x128xf32, #tpu.memory_space<vmem>>) attributes {dimension_semantics = [#tpu.dimension_semantics<parallel>], iteration_bounds = array<i64: 1>, scalar_prefetch = 0 : i64, scratch_operands = 0 : i64, tpu.core_type = #tpu.core_type<tc>, window_params = [{transform_indices = @transform_0, window_bounds = array<i64: 2>}, {transform_indices = @transform_1, window_bounds = array<i64: 8, 128>}, {transform_indices = @transform_2, window_bounds = array<i64: 8, 128>}, {transform_indices = @transform_3, window_bounds = array<i64: 8, 128>}]} {
    %c0 = arith.constant 0 : index
    %c0_0 = arith.constant 0 : index
    %0 = vector.load %arg2[%c0, %c0_0] : memref<8x128xf32, #tpu.memory_space<vmem>>, vector<8x128xf32>
    %c0_1 = arith.constant 0 : index
    %c0_2 = arith.constant 0 : index
    %1 = vector.load %arg3[%c0_1, %c0_2] : memref<8x128xf32, #tpu.memory_space<vmem>>, vector<8x128xf32>
    %c0_3 = arith.constant 0 : index
    %2 = memref.load %arg1[%c0_3] : memref<2xf32, #tpu.memory_space<smem>>
    %c1 = arith.constant 1 : index
    %3 = memref.load %arg1[%c1] : memref<2xf32, #tpu.memory_space<smem>>
    %4 = math.absf %0 : vector<8x128xf32>
    %cst = arith.constant 0.000000e+00 : f32
    %5 = vector.broadcast %cst : f32 to vector<8x128xf32>
    %6 = arith.subf %5, %4 : vector<8x128xf32>
    %7 = math.exp %6 : vector<8x128xf32>
    %cst_4 = arith.constant 0.000000e+00 : f32
    %8 = vector.broadcast %cst_4 : f32 to vector<8x128xf32>
    %9 = arith.maximumf %0, %8 : vector<8x128xf32>
    %10 = arith.mulf %0, %1 : vector<8x128xf32>
    %11 = arith.subf %9, %10 : vector<8x128xf32>
    %12 = math.log1p %7 : vector<8x128xf32>
    %13 = arith.addf %11, %12 : vector<8x128xf32>
    %cst_5 = arith.constant 1.000000e+00 : f32
    %14 = vector.broadcast %cst_5 : f32 to vector<8x128xf32>
    %15 = arith.addf %14, %7 : vector<8x128xf32>
    %cst_6 = arith.constant 1.000000e+00 : f32
    %16 = vector.broadcast %cst_6 : f32 to vector<8x128xf32>
    %17 = arith.divf %16, %15 : vector<8x128xf32>
    %cst_7 = arith.constant 0.000000e+00 : f32
    %18 = vector.broadcast %cst_7 : f32 to vector<8x128xf32>
    %19 = arith.cmpf oge, %0, %18 : vector<8x128xf32>
    %20 = arith.mulf %7, %17 : vector<8x128xf32>
    %21 = arith.select %19, %17, %20 : vector<8x128xi1>, vector<8x128xf32>
    %22 = arith.mulf %21, %1 : vector<8x128xf32>
    %cst_8 = arith.constant 1.000000e+00 : f32
    %23 = vector.broadcast %cst_8 : f32 to vector<8x128xf32>
    %24 = arith.subf %23, %21 : vector<8x128xf32>
    %cst_9 = arith.constant 1.000000e+00 : f32
    %25 = vector.broadcast %cst_9 : f32 to vector<8x128xf32>
    %26 = arith.subf %25, %1 : vector<8x128xf32>
    %27 = arith.mulf %24, %26 : vector<8x128xf32>
    %28 = arith.addf %22, %27 : vector<8x128xf32>
    %cst_10 = arith.constant 1.000000e+00 : f32
    %29 = vector.broadcast %cst_10 : f32 to vector<8x128xf32>
    %30 = arith.subf %29, %28 : vector<8x128xf32>
    %cst_11 = arith.constant 5.000000e-01 : f32
    %31 = vector.broadcast %cst_11 : f32 to vector<8x128xf32>
    %32 = arith.subf %28, %31 : vector<8x128xf32>
    %cst_12 = arith.constant 0.000000e+00 : f32
    %33 = vector.broadcast %cst_12 : f32 to vector<8x128xf32>
    %34 = arith.maximumf %32, %33 : vector<8x128xf32>
    %cst_13 = arith.constant 4.000000e+00 : f32
    %35 = vector.broadcast %cst_13 : f32 to vector<8x128xf32>
    %36 = arith.mulf %35, %34 : vector<8x128xf32>
    %37 = arith.mulf %36, %36 : vector<8x128xf32>
    %38 = arith.mulf %37, %37 : vector<8x128xf32>
    %39 = arith.mulf %38, %37 : vector<8x128xf32>
    %40 = arith.mulf %39, %36 : vector<8x128xf32>
    %41 = arith.mulf %30, %30 : vector<8x128xf32>
    %cst_14 = arith.constant 2.500000e-01 : f32
    %42 = vector.broadcast %cst_14 : f32 to vector<8x128xf32>
    %43 = arith.mulf %42, %41 : vector<8x128xf32>
    %44 = arith.addf %40, %43 : vector<8x128xf32>
    %45 = vector.broadcast %2 : f32 to vector<8x128xf32>
    %46 = arith.mulf %45, %44 : vector<8x128xf32>
    %47 = vector.broadcast %3 : f32 to vector<8x128xf32>
    %48 = arith.mulf %47, %41 : vector<8x128xf32>
    %49 = arith.addf %46, %48 : vector<8x128xf32>
    %50 = arith.mulf %49, %13 : vector<8x128xf32>
    %c0_15 = arith.constant 0 : index
    %c0_16 = arith.constant 0 : index
    %51 = vector.load %arg4[%c0_15, %c0_16] : memref<8x128xf32, #tpu.memory_space<vmem>>, vector<8x128xf32>
    tpu.vector_store %arg4[%c0_15, %c0_16], %50 {strides = array<i32>} : memref<8x128xf32, #tpu.memory_space<vmem>>, vector<8x128xf32>,
    return
  }
  func.func @transform_0(%arg0: i32) -> i32 {
    %c0_i32 = arith.constant 0 : i32
    %c0_i32_0 = arith.constant 0 : i32
    return %c0_i32 : i32
  }
  func.func @transform_1(%arg0: i32) -> (i32, i32) {
    %c0_i32 = arith.constant 0 : i32
    %c0_i32_0 = arith.constant 0 : i32
    return %arg0, %c0_i32 : i32, i32
  }
  func.func @transform_2(%arg0: i32) -> (i32, i32) {
    %c0_i32 = arith.constant 0 : i32
    %c0_i32_0 = arith.constant 0 : i32
    return %arg0, %c0_i32 : i32, i32
  }
  func.func @transform_3(%arg0: i32) -> (i32, i32) {
    %c0_i32 = arith.constant 0 : i32
    %c0_i32_0 = arith.constant 0 : i32
    return %arg0, %c0_i32 : i32, i32
  }
}

</mosaic_0001>

<bundles_post_ra>
// kernel: tpu_custom_call.1
= control target key start
LH: loop header
LB: loop body
LE: loop exit
PB: predicated region body
PF: predicated region fallthrough
CT: control target
= control target key end

     0   :  { %8 = vsyncpa [#allocation5], 0  ;;  %s278_s0 = inlined_call_operand.hbm [shape: f32[2], index: 0, kind: input, shape index: {}]   ;;  %s279_s1 = inlined_call_operand.hbm [shape: f32[8,128], index: 1, kind: input, shape index: {}]   ;;  %s280_s2 = inlined_call_operand.hbm [shape: f32[8,128], index: 2, kind: input, shape index: {}]   ;;  %s281_s3 = inlined_call_operand.hbm [shape: f32[8,128], index: 3, kind: output, shape index: {}]  }
   0x1   :  { %9 = vsyncpa [#allocation3], 0 }
   0x2   :  { %10 = vsyncpa [#allocation8], 0 }
   0x3   :  { %11 = vsyncpa [#allocation4], 0  ;;  %s17_s14 = sshll.u32 %s278_s0, 4  ;;  %s26_s17 = sshll.u32 %s279_s1, 4  ;;  %s18_s14 = int_to_ptr.hbm [resolvable:$true] %s17_s14  ;;  %s27_s17 = int_to_ptr.hbm [resolvable:$true] %s26_s17 }
   0x4   :  { %s242_s18 = smov [#allocation2]   ;;  %s243_s19 = smov [#allocation6]  }
   0x5   :  { %20 = dma.hbm_to_smem %s18_s14, 16, %s242_s18, [#allocation5]  }
   0x6   :  { %s28_s20 = sshll.u32 %s243_s19, 4  ;;  %s37_s23 = sshll.u32 %s280_s2, 4  ;;  %s29_s20 = int_to_ptr.vmem [resolvable:$true] %s28_s20  ;;  %s38_s23 = int_to_ptr.hbm [resolvable:$true] %s37_s23 }
   0x7   :  { %31 = dma.hbm_to_vmem [thread:$0]  %s27_s17, 128, %s29_s20, [#allocation3]  }
   0x8   :  { %s244_s24 = smov [#allocation7]  }
   0x9   :  { %s39_s25 = sshll.u32 %s244_s24, 4  ;;  %s40_s25 = int_to_ptr.vmem [resolvable:$true] %s39_s25 }
   0xa   :  { %42 = dma.hbm_to_vmem [thread:$0]  %s38_s23, 128, %s40_s25, [#allocation8]  }
   0xb   :  { %234 = dma.done.wait [#allocation5], 16  }
   0xc   :  { %235 = vsyncadd [#allocation5], 4294967280 }
   0xd   :  { %236 = dma.done.wait [#allocation3], 128  }
   0xe   :  { %237 = vsyncadd [#allocation3], 4294967168 }
   0xf   :  { %238 = dma.done.wait [#allocation8], 128  }
  0x10   :  { %239 = vsyncadd [#allocation8], 4294967168 }
  0x11   :  { %55 = sfence }
  0x12   :  { %v56_v0 = vld [vmem:[#allocation6] sm:$0xff]  ;;  %v57_v14 = vld [vmem:[#allocation7] sm:$0xff]  ;;  %s138_s0 = sld [smem:[#allocation2 + $0x1]]  ;;  %s245_s2 = smov [#allocation9]  }
  0x13   :  { %v60_v1 = vand.u32 2147483647, %v56_v0  ;;  %vm93_vm4 = vcmp.ge.f32.partialorder %v56_v0, 0.0  ;;  %v98_v18 = vsub.f32 1.0, %v57_v14  ;;  %s58_s1 = sld [smem:[#allocation2]]  ;;  %v64_v34 = vmax.f32 %v56_v0, 0.0 }
  0x14   :  { %v65_v35 = vmul.f32 %v57_v14, %v56_v0  ;;  %s124_s26 = sshll.u32 %s245_s2, 4  ;;  %s126_s29 = sshll.u32 %s281_s3, 4  ;;  %s125_s26 = int_to_ptr.vmem [resolvable:$true] %s124_s26  ;;  %s127_s29 = int_to_ptr.hbm [resolvable:$true] %s126_s29 }
  0x15   :  { %v61_v2 = vsub.f32 0.0, %v60_v1 }
  0x16   :  { %v66_v42 = vsub.f32 %v64_v34, %v65_v35 }
  0x17   :  { %v62_v3 = vmul.f32 1.442695, %v61_v2 }
  0x18   :  { %v114_v41 = vstv %s138_s0 }
  0x19   :  { %144 = vpow2.f32 %v62_v3  ;;  %v112_v45 = vstv %s58_s1 }
  0x1f   :  { %v145_v4 = vpop.eup %144 }
  0x20   :  { %v67_v5 = vadd.f32 1.0, %v145_v4  ;;  %v70_v25 = vmul.f32 -0.5, %v145_v4  ;;  %v73_v31 = vand.u32 2147483647, %v145_v4 }
  0x22   :  { %146 = vrcp.f32 %v67_v5  ;;  %v89_v8 = vand.u32 2147483648, %v67_v5  ;;  %vm83_vm0 = vweird.f32 %v67_v5  ;;  %v87_v10 = vand.u32 2147483647, %v67_v5 }
  0x23   :  { %148 = vlog2.f32 %v67_v5  ;;  %v71_v29 = vadd.f32 1.0, %v70_v25  ;;  %vm74_vm5 = vcmp.lt.f32.partialorder %v73_v31, 0.0004427343 }
  0x24   :  { %v90_v12 = vor.u32 1.1754944e-38, %v89_v8  ;;  %vm88_vm3 = vcmp.eq.f32.partialorder %v87_v10, 8.507059e+37 }
  0x25   :  { %v72_v38 = vmul.f32 %v145_v4, %v71_v29 }
  0x28   :  { %v147_v6 = vpop.eup %146 }
  0x29   :  { %v79_v7 = vmul.f32 %v147_v6, %v67_v5  ;;  %vm84_vm1 = vweird.f32 %v147_v6  ;;  %v149_v30 = vpop.eup %148 }
  0x2a   :  { %vm85_vm2 = vmor %vm83_vm0, %vm84_vm1  ;;  %v69_v37 = vmul.f32 0.6931472, %v149_v30 }
  0x2b   :  { %v80_v9 = vsub.f32 1.0, %v79_v7 }
  0x2c   :  { %v75_v44 = vsel %vm74_vm5, %v72_v38, %v69_v37 }
  0x2d   :  { %v81_v11 = vmul.f32 %v147_v6, %v80_v9  ;;  %v76_v48 = vadd.f32 %v75_v44, %v66_v42 }
  0x2f   :  { %v82_v13 = vadd.f32 %v147_v6, %v81_v11 }
  0x31   :  { %v86_v15 = vsel %vm85_vm2, %v147_v6, %v82_v13 }
  0x32   :  { %v91_v16 = vsel %vm88_vm3, %v90_v12, %v86_v15 }
  0x33   :  { %v94_v17 = vmul.f32 %v145_v4, %v91_v16 }
  0x35   :  { %v95_v19 = vsel %vm93_vm4, %v91_v16, %v94_v17 }
  0x36   :  { %v96_v20 = vmul.f32 %v95_v19, %v57_v14  ;;  %v97_v21 = vsub.f32 1.0, %v95_v19 }
  0x38   :  { %v99_v22 = vmul.f32 %v98_v18, %v97_v21 }
  0x3a   :  { %v100_v23 = vadd.f32 %v99_v22, %v96_v20 }
  0x3c   :  { %v139_v24 = vadd.f32 -0.5, %v100_v23  ;;  %v101_v26 = vsub.f32 1.0, %v100_v23 }
  0x3e   :  { %v103_v27 = vmax.f32 %v139_v24, 0.0  ;;  %v109_v33 = vmul.f32 %v101_v26, %v101_v26 }
  0x40   :  { %v104_v28 = vmul.f32 4.0, %v103_v27  ;;  %v110_v40 = vmul.f32 0.25, %v109_v33  ;;  %v115_v47 = vmul.f32 %v114_v41, %v109_v33 }
  0x42   :  { %v105_v32 = vmul.f32 %v104_v28, %v104_v28 }
  0x44   :  { %v106_v36 = vmul.f32 %v105_v32, %v105_v32 }
  0x46   :  { %v107_v39 = vmul.f32 %v106_v36, %v105_v32 }
  0x48   :  { %v108_v43 = vmul.f32 %v107_v39, %v104_v28 }
  0x4a   :  { %v111_v46 = vadd.f32 %v110_v40, %v108_v43 }
  0x4c   :  { %v113_v49 = vmul.f32 %v112_v45, %v111_v46 }
  0x4e   :  { %v116_v50 = vadd.f32 %v115_v47, %v113_v49 }
  0x50   :  { %v117_v51 = vmul.f32 %v116_v50, %v76_v48 }
  0x52   :  { %118 = vst [vmem:[#allocation9] sm:$0xff] %v117_v51 }
  0x53   :  { %129 = dma.vmem_to_hbm [thread:$0]  %s125_s26, 128, %s127_s29, [#allocation4]  }
  0x54   :  { %240 = dma.done.wait [#allocation4], 128  }
  0x55   :  { %241 = vsyncadd [#allocation4], 4294967168 }
  0x56   :  { %134 = vsyncpa [#allocation3], 1 }
  0x57   :  { %135 = vsyncpa [#allocation8], 1 }
  0x58   :  { %136 = vsyncpa [#allocation4], 1 }
  0x59   :  { %137 = vsyncpa [#allocation5], 1 }

</bundles_post_ra>
